<compile_context>
chip_gen: v5e
topology: v5e:2x2
jax: 0.10.0
libtpu: 0.0.40
codegen_flags: <defaults>
</compile_context>

<pallas_src>
import functools

import jax
import jax.numpy as jnp
from jax.experimental import pallas as pl
from jax.experimental.pallas import tpu as pltpu

NUM_NEURONS = 20
LEAKY_SLOPE = 0.01          # nn.LeakyReLU default negative_slope
MAX_BATCH_TILE = 2048       # v6e/v5e feedback: big tiles amortize per-step overhead
MIN_SPLIT_BATCH = 512       # at/above this, force >=2 (even) grid steps for v7x megacore


def _cdiv(a, b):
    return -(-a // b)


def _round_up(n, m):
    return _cdiv(n, m) * m


def _posterior_mlp_kernel(x_ref, w1_ref, b1_ref, w2_ref, b2_ref, w3_ref, b3_ref,
                          out_ref, *, pack, out_dim):
    """Per-batch-tile hot path: 3 MXU matmuls + LeakyReLU + sigmoid, all in VMEM.

    Everything is f32 (x is read straight from HBM with no wrapper convert); the
    matmuls accumulate in f32 on the MXU, elementwise math runs on the f32 VPU/EUP
    path so it is v5e-safe."""
    x = x_ref[...]                                                    # (TB, D_in) f32

    h = jnp.dot(x, w1_ref[...], preferred_element_type=jnp.float32) + b1_ref[...]
    h = jnp.maximum(h, LEAKY_SLOPE * h)                               # LeakyReLU
    h = jnp.dot(h, w2_ref[...], preferred_element_type=jnp.float32) + b2_ref[...]
    h = jnp.maximum(h, LEAKY_SLOPE * h)                               # LeakyReLU
    y = jnp.dot(h, w3_ref[...], preferred_element_type=jnp.float32) + b3_ref[...]
    y = jax.nn.sigmoid(y)                                             # (TB, 2*S) f32

    if pack > 1:
        # Lane-dense store: fold `pack` consecutive rows into the lane axis so the
        # output block is pack*out_dim (=128) lanes wide -> unmasked full-width
        # stores / dense DMA instead of 16-lane masked vst. The relayout is XLU
        # work, which is otherwise idle in this kernel.
        tb = y.shape[0]
        y = y.reshape(tb // pack, pack, out_dim)        # layout no-op split
        y = jnp.concatenate([y[:, j, :] for j in range(pack)], axis=-1)
    out_ref[...] = y.astype(out_ref.dtype)


def posterior_forward(x, params, state_dim, out_dtype=jnp.float32):
    """x: (B, state_dim + action_dim + observation_dim) f32.
    Returns (B, 2, state_dim): [:,0,:] = sigmoid(mu logits), [:,1,:] = sigmoid(var logits).
    Pass out_dtype=jnp.bfloat16 to halve output-side HBM traffic if downstream tolerates it."""
    w1, b1, w2, b2, w3, b3 = params
    B, in_dim = x.shape
    out_dim = 2 * state_dim

    # Lane-packing factor for the output store (16-wide rows -> 128-wide packed rows).
    pack = (128 // out_dim) if (out_dim <= 128 and 128 % out_dim == 0) else 1

    if B < MIN_SPLIT_BATCH:
        # Single grid step covering the whole batch: block dims == full array dims,
        # so no (8,128) alignment padding, no jnp.pad copy, no y[:B] slice at all.
        n_steps, tb, b_pad = 1, B, B
        if B % pack != 0:
            pack = 1                                   # tiny batch; packing irrelevant
    else:
        # >=2 and even grid steps so ("parallel",) shards the batch across both v7x
        # TensorCores; tile capped at MAX_BATCH_TILE for v6e/v5e step amortization.
        row_align = 8 * pack                           # rows per (8,128) output tile
        n_steps = max(2, _cdiv(B, MAX_BATCH_TILE))
        n_steps += n_steps % 2
        tb = _round_up(_cdiv(B, n_steps), row_align)
        b_pad = n_steps * tb                           # waste < n_steps*row_align rows

    if b_pad != B:
        # Bounded alignment padding (a few % worst case), not round-up-to-a-full-tile.
        x = jnp.pad(x, ((0, b_pad - B), (0, 0)))

    b1r, b2r, b3r = b1.reshape(1, -1), b2.reshape(1, -1), b3.reshape(1, -1)

    def _resident(shape):
        # Same block index every grid step -> DMA'd once, stays VMEM-resident.
        return pl.BlockSpec(shape, lambda i: (0, 0))

    mac = in_dim * NUM_NEURONS + NUM_NEURONS * NUM_NEURONS + NUM_NEURONS * out_dim
    out_bytes = jnp.dtype(out_dtype).itemsize
    cost = pl.CostEstimate(
        flops=2 * b_pad * mac,
        transcendentals=b_pad * out_dim,                        # sigmoid
        bytes_accessed=(b_pad * in_dim * 4                      # x (f32, read once)
                        + b_pad * out_dim * out_bytes           # y
                        + 4 * (mac + 2 * NUM_NEURONS + out_dim)))  # weights + biases

    kernel = functools.partial(_posterior_mlp_kernel, pack=pack, out_dim=out_dim)

    y = pl.pallas_call(
        kernel,
        out_shape=jax.ShapeDtypeStruct((b_pad // pack, pack * out_dim), out_dtype),
        grid=(n_steps,),
        in_specs=[
            pl.BlockSpec((tb, in_dim), lambda i: (i, 0)),       # x: tiled over batch
            _resident((in_dim, NUM_NEURONS)),                   # w1
            _resident((1, NUM_NEURONS)),                        # b1
            _resident((NUM_NEURONS, NUM_NEURONS)),              # w2
            _resident((1, NUM_NEURONS)),                        # b2
            _resident((NUM_NEURONS, out_dim)),                  # w3
            _resident((1, out_dim)),                            # b3
        ],
        out_specs=pl.BlockSpec((tb // pack, pack * out_dim), lambda i: (i, 0)),
        compiler_params=pltpu.CompilerParams(
            dimension_semantics=("parallel",)),
        cost_estimate=cost,
    )(x, w1, b1r, w2, b2r, w3, b3r)

    # Packed layout has identical row-major bytes: reshape back is free; slice only
    # if alignment padding was actually added.
    y = y.reshape(b_pad, out_dim)
    if b_pad != B:
        y = y[:B]
    return y.reshape(B, 2, state_dim)


def init_params(key, state_dim, action_dim, observation_dim):
    """Deterministic synthetic init (PyTorch-Linear-style uniform fan-in)."""
    in_dim = state_dim + action_dim + observation_dim
    dims = [(in_dim, NUM_NEURONS), (NUM_NEURONS, NUM_NEURONS),
            (NUM_NEURONS, 2 * state_dim)]
    params = []
    for fan_in, fan_out in dims:
        key, kw, kb = jax.random.split(key, 3)
        bound = float(fan_in) ** -0.5
        w = jax.random.uniform(kw, (fan_in, fan_out), jnp.float32, -bound, bound)
        b = jax.random.uniform(kb, (fan_out,), jnp.float32, -bound, bound)
        params += [w, b]
    return tuple(params)


def _reference_forward(x, params, state_dim):
    """Plain-JAX reference matching the PyTorch module."""
    w1, b1, w2, b2, w3, b3 = params
    h = x @ w1 + b1
    h = jnp.where(h > 0, h, LEAKY_SLOPE * h)
    h = h @ w2 + b2
    h = jnp.where(h > 0, h, LEAKY_SLOPE * h)
    y = h @ w3 + b3
    return jax.nn.sigmoid(y).reshape(-1, 2, state_dim)


if __name__ == "__main__":
    state_dim, action_dim, observation_dim = 8, 4, 16
    in_dim = state_dim + action_dim + observation_dim

    key = jax.random.PRNGKey(0)
    key, kp = jax.random.split(key)
    params = init_params(kp, state_dim, action_dim, observation_dim)

    # B=2 is the deployment-sized case (single full-array block, no padding);
    # B=1000 exercises the multi-step, lane-packed, alignment-padded path.
    for batch in (2, 1000):
        key, kx = jax.random.split(key)
        x = jax.random.normal(kx, (batch, in_dim), jnp.float32)

        out = jax.block_until_ready(posterior_forward(x, params, state_dim))
        ref = _reference_forward(x, params, state_dim)

        assert out.shape == (batch, 2, state_dim)
        # f32 everywhere; only MXU-vs-XLA matmul rounding differs on a [0,1] output.
        err = float(jnp.max(jnp.abs(out - ref)))
        assert err < 1e-2, err

    print("KERNEL_OK")
</pallas_src>

<mosaic_0001>
module attributes {stable_mosaic.version = 11 : i64} {
  func.func @_posterior_mlp_kernel(%arg0: i32, %arg1: memref<2x28xf32, #tpu.memory_space<vmem>>, %arg2: memref<28x20xf32, #tpu.memory_space<vmem>>, %arg3: memref<1x20xf32, #tpu.memory_space<vmem>>, %arg4: memref<20x20xf32, #tpu.memory_space<vmem>>, %arg5: memref<1x20xf32, #tpu.memory_space<vmem>>, %arg6: memref<20x16xf32, #tpu.memory_space<vmem>>, %arg7: memref<1x16xf32, #tpu.memory_space<vmem>>, %arg8: memref<2x16xf32, #tpu.memory_space<vmem>>) attributes {dimension_semantics = [#tpu.dimension_semantics<parallel>], iteration_bounds = array<i64: 1>, scalar_prefetch = 0 : i64, scratch_operands = 0 : i64, tpu.core_type = #tpu.core_type<tc>, window_params = [{transform_indices = @transform_0, window_bounds = array<i64: 2, 28>}, {pipeline_mode = #tpu.pipeline_mode<synchronous>, transform_indices = @transform_1, window_bounds = array<i64: 28, 20>}, {pipeline_mode = #tpu.pipeline_mode<synchronous>, transform_indices = @transform_2, window_bounds = array<i64: 1, 20>}, {pipeline_mode = #tpu.pipeline_mode<synchronous>, transform_indices = @transform_3, window_bounds = array<i64: 20, 20>}, {pipeline_mode = #tpu.pipeline_mode<synchronous>, transform_indices = @transform_4, window_bounds = array<i64: 1, 20>}, {pipeline_mode = #tpu.pipeline_mode<synchronous>, transform_indices = @transform_5, window_bounds = array<i64: 20, 16>}, {pipeline_mode = #tpu.pipeline_mode<synchronous>, transform_indices = @transform_6, window_bounds = array<i64: 1, 16>}, {transform_indices = @transform_7, window_bounds = array<i64: 2, 16>}]} {
    %c0 = arith.constant 0 : index
    %c0_0 = arith.constant 0 : index
    %0 = vector.load %arg1[%c0, %c0_0] : memref<2x28xf32, #tpu.memory_space<vmem>>, vector<2x28xf32>
    %c0_1 = arith.constant 0 : index
    %c0_2 = arith.constant 0 : index
    %1 = vector.load %arg2[%c0_1, %c0_2] : memref<28x20xf32, #tpu.memory_space<vmem>>, vector<28x20xf32>
    %cst = arith.constant dense<0.000000e+00> : vector<2x20xf32>
    %2 = tpu.matmul %0, %1, %cst {dimension_numbers = #tpu.dot_dimension_numbers<[1], [0], [0], [1], [0, 0, 1, 1], [], []>} : vector<2x28xf32>, vector<28x20xf32>, vector<2x20xf32> -> vector<2x20xf32>
    %c0_3 = arith.constant 0 : index
    %c0_4 = arith.constant 0 : index
    %3 = vector.load %arg3[%c0_3, %c0_4] : memref<1x20xf32, #tpu.memory_space<vmem>>, vector<1x20xf32>
    %4 = vector.broadcast %3 : vector<1x20xf32> to vector<2x20xf32>
    %5 = arith.addf %2, %4 : vector<2x20xf32>
    %cst_5 = arith.constant 0.00999999977 : f32
    %6 = vector.broadcast %cst_5 : f32 to vector<2x20xf32>
    %7 = arith.mulf %6, %5 : vector<2x20xf32>
    %8 = arith.maximumf %5, %7 : vector<2x20xf32>
    %c0_6 = arith.constant 0 : index
    %c0_7 = arith.constant 0 : index
    %9 = vector.load %arg4[%c0_6, %c0_7] : memref<20x20xf32, #tpu.memory_space<vmem>>, vector<20x20xf32>
    %cst_8 = arith.constant dense<0.000000e+00> : vector<2x20xf32>
    %10 = tpu.matmul %8, %9, %cst_8 {dimension_numbers = #tpu.dot_dimension_numbers<[1], [0], [0], [1], [0, 0, 1, 1], [], []>} : vector<2x20xf32>, vector<20x20xf32>, vector<2x20xf32> -> vector<2x20xf32>
    %c0_9 = arith.constant 0 : index
    %c0_10 = arith.constant 0 : index
    %11 = vector.load %arg5[%c0_9, %c0_10] : memref<1x20xf32, #tpu.memory_space<vmem>>, vector<1x20xf32>
    %12 = vector.broadcast %11 : vector<1x20xf32> to vector<2x20xf32>
    %13 = arith.addf %10, %12 : vector<2x20xf32>
    %cst_11 = arith.constant 0.00999999977 : f32
    %14 = vector.broadcast %cst_11 : f32 to vector<2x20xf32>
    %15 = arith.mulf %14, %13 : vector<2x20xf32>
    %16 = arith.maximumf %13, %15 : vector<2x20xf32>
    %c0_12 = arith.constant 0 : index
    %c0_13 = arith.constant 0 : index
    %17 = vector.load %arg6[%c0_12, %c0_13] : memref<20x16xf32, #tpu.memory_space<vmem>>, vector<20x16xf32>
    %cst_14 = arith.constant dense<0.000000e+00> : vector<2x16xf32>
    %18 = tpu.matmul %16, %17, %cst_14 {dimension_numbers = #tpu.dot_dimension_numbers<[1], [0], [0], [1], [0, 0, 1, 1], [], []>} : vector<2x20xf32>, vector<20x16xf32>, vector<2x16xf32> -> vector<2x16xf32>
    %c0_15 = arith.constant 0 : index
    %c0_16 = arith.constant 0 : index
    %19 = vector.load %arg7[%c0_15, %c0_16] : memref<1x16xf32, #tpu.memory_space<vmem>>, vector<1x16xf32>
    %20 = vector.broadcast %19 : vector<1x16xf32> to vector<2x16xf32>
    %21 = arith.addf %18, %20 : vector<2x16xf32>
    %22 = arith.negf %21 : vector<2x16xf32>
    %23 = math.exp %22 : vector<2x16xf32>
    %cst_17 = arith.constant 1.000000e+00 : f32
    %24 = vector.broadcast %cst_17 : f32 to vector<2x16xf32>
    %25 = arith.addf %24, %23 : vector<2x16xf32>
    %26 = arith.divf %24, %25 : vector<2x16xf32>
    %c0_18 = arith.constant 0 : index
    %c0_19 = arith.constant 0 : index
    %27 = vector.load %arg8[%c0_18, %c0_19] : memref<2x16xf32, #tpu.memory_space<vmem>>, vector<2x16xf32>
    tpu.vector_store %arg8[%c0_18, %c0_19], %26 {strides = array<i32>} : memref<2x16xf32, #tpu.memory_space<vmem>>, vector<2x16xf32>,
    return
  }
  func.func @transform_0(%arg0: i32) -> (i32, i32) {
    %c0_i32 = arith.constant 0 : i32
    %c0_i32_0 = arith.constant 0 : i32
    return %arg0, %c0_i32 : i32, i32
  }
  func.func @transform_1(%arg0: i32) -> (i32, i32) {
    %c0_i32 = arith.constant 0 : i32
    %c0_i32_0 = arith.constant 0 : i32
    %c0_i32_1 = arith.constant 0 : i32
    return %c0_i32, %c0_i32_0 : i32, i32
  }
  func.func @transform_2(%arg0: i32) -> (i32, i32) {
    %c0_i32 = arith.constant 0 : i32
    %c0_i32_0 = arith.constant 0 : i32
    %c0_i32_1 = arith.constant 0 : i32
    return %c0_i32, %c0_i32_0 : i32, i32
  }
  func.func @transform_3(%arg0: i32) -> (i32, i32) {
    %c0_i32 = arith.constant 0 : i32
    %c0_i32_0 = arith.constant 0 : i32
    %c0_i32_1 = arith.constant 0 : i32
    return %c0_i32, %c0_i32_0 : i32, i32
  }
  func.func @transform_4(%arg0: i32) -> (i32, i32) {
    %c0_i32 = arith.constant 0 : i32
    %c0_i32_0 = arith.constant 0 : i32
    %c0_i32_1 = arith.constant 0 : i32
    return %c0_i32, %c0_i32_0 : i32, i32
  }
  func.func @transform_5(%arg0: i32) -> (i32, i32) {
    %c0_i32 = arith.constant 0 : i32
    %c0_i32_0 = arith.constant 0 : i32
    %c0_i32_1 = arith.constant 0 : i32
    return %c0_i32, %c0_i32_0 : i32, i32
  }
  func.func @transform_6(%arg0: i32) -> (i32, i32) {
    %c0_i32 = arith.constant 0 : i32
    %c0_i32_0 = arith.constant 0 : i32
    %c0_i32_1 = arith.constant 0 : i32
    return %c0_i32, %c0_i32_0 : i32, i32
  }
  func.func @transform_7(%arg0: i32) -> (i32, i32) {
    %c0_i32 = arith.constant 0 : i32
    %c0_i32_0 = arith.constant 0 : i32
    return %arg0, %c0_i32 : i32, i32
  }
}

</mosaic_0001>

<bundles_post_ra>
// kernel: tpu_custom_call.1
= control target key start
LH: loop header
LB: loop body
LE: loop exit
PB: predicated region body
PF: predicated region fallthrough
CT: control target
= control target key end

     0   :  { %vm40_vm0 = vcmask 1043456   ;;  %s302_s0 = inlined_call_operand.vmem [shape: f32[2,28], index: 0, kind: input, shape index: {}]   ;;  %s303_s1 = inlined_call_operand.vmem [shape: f32[28,20], index: 1, kind: input, shape index: {}]   ;;  %s304_s2 = inlined_call_operand.vmem [shape: f32[1,20], index: 2, kind: input, shape index: {}]   ;;  %s305_s3 = inlined_call_operand.vmem [shape: f32[20,20], index: 3, kind: input, shape index: {}]   ;;  %s306_s4 = inlined_call_operand.vmem [shape: f32[1,20], index: 4, kind: input, shape index: {}]   ;;  %s307_s5 = inlined_call_operand.vmem [shape: f32[20,16], index: 5, kind: input, shape index: {}]   ;;  %s308_s6 = inlined_call_operand.vmem [shape: f32[1,16], index: 6, kind: input, shape index: {}]   ;;  %s309_s7 = inlined_call_operand.hbm [shape: f32[2,16], index: 7, kind: output, shape index: {}]  }
   0x1   :  { %v31_v0 = vld [vmem:[%s303_s1 + $0x18] sm:$0xf]  ;;  %v30_v1 = vld [vmem:[%s303_s1 + $0x10] sm:$0xff]  ;;  %v29_v2 = vld [vmem:[%s303_s1 + $0x8] sm:$0xff] }
   0x2   :  { %172 = vmatpush.msk.msra.mxu0 %vm40_vm0, %v31_v0 }
   0x4   :  { %57 = vmatpush.msra.mxu0 %v30_v1 }
   0x5   :  { %12 = vsyncpa [#allocation3], 0  ;;  %v28_v3 = vld [vmem:[%s303_s1] sm:$0xff]  ;;  %vm36_vm1 = vcmask 228352   ;;  %v68_v5 = vld [vmem:[%s305_s3 + $0x10] sm:$0xf] }
   0x6   :  { %58 = vmatpush.msra.mxu0 %v29_v2  ;;  %v27_v4 = vld [vmem:[%s302_s0] sm:$0x3]  ;;  %174 = vmatpush.msk.msra.mxu1 %vm40_vm0, %v68_v5  ;;  %v67_v6 = vld [vmem:[%s305_s3 + $0x8] sm:$0xff]  ;;  %vm73_vm2 = vcmask 162816   ;;  %v104_v13 = vld [vmem:[%s307_s5 + $0x10] sm:$0xf] }
   0x7   :  { %v66_v7 = vld [vmem:[%s305_s3] sm:$0xff]  ;;  %176 = vmatpush.msk.msra.mxu2 %vm40_vm0, %v104_v13  ;;  %v103_v14 = vld [vmem:[%s307_s5 + $0x8] sm:$0xff]  ;;  %vm154_vm6 = vcmask 123904  }
   0x8   :  { %59 = vmatpush.msra.mxu0 %v28_v3  ;;  %94 = vmatpush.msra.mxu1 %v67_v6  ;;  %v180_v8 = vld [vmem:[%s304_s2] ss:$0 sm:$0xff] }
   0x9   :  { %173 = vmatmul.msk.f32.vlgmr.msra.gmra.mxu0 %vm36_vm1, %v27_v4  ;;  %129 = vmatpush.msra.mxu2 %v103_v14  ;;  %v102_v15 = vld [vmem:[%s307_s5] sm:$0xff] }
   0xa   :  { %95 = vmatpush.msra.mxu1 %v66_v7  ;;  %v181_v16 = vld [vmem:[%s306_s4] ss:$0 sm:$0xff]  ;;  %s213_s4 = smov [#allocation2]  }
   0xb   :  { %130 = vmatpush.msra.mxu2 %v102_v15  ;;  %v182_v21 = vld [vmem:[%s308_s6] ss:$0 sm:$0xff]  ;;  %s161_s5 = sshll.u32 %s213_s4, 4  ;;  %s163_s6 = sshll.u32 %s309_s7, 4  ;;  %s162_s5 = int_to_ptr.vmem [resolvable:$true] %s161_s5  ;;  %s164_s6 = int_to_ptr.hbm [resolvable:$true] %s163_s6 }
  0x86   :  { %v61_v9 = vpop.f32.mrf.mxu0 }
  0x87   :  { %v62_v10 = vadd.f32 %v180_v8, %v61_v9 }
  0x89   :  { %v64_v11 = vmul.f32 0.01, %v62_v10 }
  0x8b   :  { %v65_v12 = vmax.f32 %v62_v10, %v64_v11 }
  0x8d   :  { %175 = vmatmul.msk.f32.vlgmr.msra.gmra.mxu1 %vm73_vm2, %v65_v12 }
 0x10a   :  { %v97_v17 = vpop.f32.mrf.mxu1 }
 0x10b   :  { %v98_v18 = vadd.f32 %v181_v16, %v97_v17 }
 0x10d   :  { %v100_v19 = vmul.f32 0.01, %v98_v18 }
 0x10f   :  { %v101_v20 = vmax.f32 %v98_v18, %v100_v19 }
 0x111   :  { %177 = vmatmul.msk.f32.vlgmr.msra.gmra.mxu2 %vm73_vm2, %v101_v20 }
 0x194   :  { %v132_v22 = vpop.f32.mrf.mxu2 }
 0x195   :  { %v133_v23 = vadd.f32 %v182_v21, %v132_v22 }
 0x197   :  { %v178_v24 = vmul.f32 -1.442695, %v133_v23 }
 0x199   :  { %183 = vpow2.f32 %v178_v24 }
 0x19f   :  { %v184_v25 = vpop.eup %183 }
 0x1a0   :  { %v138_v26 = vadd.f32 1.0, %v184_v25 }
 0x1a2   :  { %185 = vrcp.f32 %v138_v26  ;;  %v150_v30 = vand.u32 2147483648, %v138_v26  ;;  %v148_v32 = vand.u32 2147483647, %v138_v26  ;;  %vm144_vm4 = vweird.f32 %v138_v26 }
 0x1a4   :  { %v151_v34 = vor.u32 1.1754944e-38, %v150_v30  ;;  %vm149_vm7 = vcmp.eq.f32.partialorder %v148_v32, 8.507059e+37 }
 0x1a8   :  { %v186_v27 = vpop.eup %185 }
 0x1a9   :  { %v140_v28 = vmul.f32 %v186_v27, %v138_v26  ;;  %vm145_vm3 = vweird.f32 %v186_v27 }
 0x1aa   :  { %vm146_vm5 = vmor %vm144_vm4, %vm145_vm3 }
 0x1ab   :  { %v141_v29 = vsub.f32 1.0, %v140_v28 }
 0x1ad   :  { %v142_v31 = vmul.f32 %v186_v27, %v141_v29 }
 0x1af   :  { %v143_v33 = vadd.f32 %v186_v27, %v142_v31 }
 0x1b1   :  { %v147_v35 = vsel %vm146_vm5, %v186_v27, %v143_v33 }
 0x1b2   :  { %v152_v36 = vsel %vm149_vm7, %v151_v34, %v147_v35 }
 0x1b3   :  { %155 = vst.msk [vmem:[#allocation2] sm:$0x3] %vm154_vm6, %v152_v36 }
 0x1b4   :  { %166 = dma.vmem_to_hbm [thread:$0]  %s162_s5, 32, %s164_s6, [#allocation3]  }
 0x1b5   :  { %211 = dma.done.wait [#allocation3], 32  }
 0x1b6   :  { %212 = vsyncadd [#allocation3], 4294967264 }
 0x1b7   :  { %171 = vsyncpa [#allocation3], 1 }

</bundles_post_ra>
